<compile_context>
chip_gen: v7x
topology: tpu7x:2x2x1
jax: 0.10.0
libtpu: 0.0.40
codegen_flags: <defaults>
</compile_context>

<pallas_src>
import math

import jax
import jax.numpy as jnp
from jax.experimental import pallas as pl
from jax.experimental.pallas import tpu as pltpu


def _hardsigmoid_kernel(x_ref, o_ref):
    x = x_ref[...]
    # relu6(x + 3) / 6, matching torch.nn.functional.hardsigmoid exactly.
    # Weak-typed Python floats keep the computation in the input dtype.
    y = jnp.minimum(jnp.maximum(x + 3.0, 0.0), 6.0) * (1.0 / 6.0)
    o_ref[...] = y.astype(o_ref.dtype)


def _jnp_hardsigmoid(x):
    # Reference / tiny-tensor / tail path: one fused XLA pass (optimal).
    return (jnp.minimum(jnp.maximum(x + 3.0, 0.0), 6.0) * (1.0 / 6.0)).astype(x.dtype)


# ---------------------------- tiling policy ---------------------------------
_TARGET_BLOCK_BYTES = 2 * 1024 * 1024   # ~2 MiB per block, dtype-invariant
_MIN_GRID_STEPS = 4                     # keep pipeline busy + feed both v7x TCs
_SMALL_BYTES = 256 * 1024               # below this a single block is fine
_MIN_KERNEL_ELEMS = 1024                # below this, plain fused jnp wins


def _pick_lane(total):
    """Largest lane width in {1024, 512, 256, 128} dividing `total`, else 0."""
    for lane in (1024, 512, 256, 128):
        if total % lane == 0:
            return lane
    return 0


def _pick_block_rows(rows, lane, itemsize):
    """Rows per block: multiple of 8, ~_TARGET_BLOCK_BYTES bytes, and at least
    _MIN_GRID_STEPS grid steps for anything beyond a couple hundred KiB."""
    total_bytes = rows * lane * itemsize
    if rows <= 8 or total_bytes <= _SMALL_BYTES:
        return rows                        # single full-extent block is legal
    tr = max(8, (_TARGET_BLOCK_BYTES // (lane * itemsize)) // 8 * 8)
    cap = max(8, (pl.cdiv(rows, _MIN_GRID_STEPS) // 8) * 8)
    return min(tr, cap, rows)


def _run_kernel(x2d):
    rows, lane = x2d.shape
    tr = _pick_block_rows(rows, lane, x2d.dtype.itemsize)
    grid = (pl.cdiv(rows, tr),)            # partial last block is masked by Pallas
    nbytes = x2d.size * x2d.dtype.itemsize
    return pl.pallas_call(
        _hardsigmoid_kernel,
        out_shape=jax.ShapeDtypeStruct((rows, lane), x2d.dtype),
        grid=grid,
        in_specs=[pl.BlockSpec((tr, lane), lambda i: (i, 0))],
        out_specs=pl.BlockSpec((tr, lane), lambda i: (i, 0)),
        compiler_params=pltpu.CompilerParams(
            dimension_semantics=("parallel",),
        ),
        cost_estimate=pl.CostEstimate(
            flops=4 * x2d.size, transcendentals=0, bytes_accessed=2 * nbytes
        ),
    )(x2d)


def hard_sigmoid(x):
    """Elementwise hardsigmoid via a Pallas TPU kernel (floating dtypes)."""
    if not jnp.issubdtype(x.dtype, jnp.floating):
        raise TypeError(f"hard_sigmoid expects a floating dtype, got {x.dtype}")

    orig_shape = x.shape
    total = int(math.prod(orig_shape))
    if total == 0:
        return x                            # empty tensor: nothing to compute

    flat = x.reshape(-1)

    lane = _pick_lane(total)
    if lane:
        bulk, tail = total, 0               # no padding / slicing needed at all
    else:
        lane = 1024                         # ragged: 1024-aligned bulk + tiny tail
        bulk = (total // lane) * lane
        tail = total - bulk

    if bulk < _MIN_KERNEL_ELEMS:
        # Tiny (or badly shaped) input: one fused XLA pass beats any kernel.
        return _jnp_hardsigmoid(flat).reshape(orig_shape)

    if tail == 0:
        out = _run_kernel(flat.reshape(bulk // lane, lane)).reshape(-1)
    else:
        # Kernel on the aligned bulk; the (<1024-element) tail in plain jnp.
        bulk_out = _run_kernel(flat[:bulk].reshape(bulk // lane, lane)).reshape(-1)
        tail_out = _jnp_hardsigmoid(flat[bulk:])
        out = jnp.concatenate([bulk_out, tail_out])

    return out.reshape(orig_shape)


def _ref_hardsigmoid(x):
    return jnp.clip(x / 6.0 + 0.5, 0.0, 1.0).astype(x.dtype)


if __name__ == "__main__":
    key = jax.random.PRNGKey(0)
    k1, k2, k3 = jax.random.split(key, 3)

    # 1) Small NCHW input consistent with the PyTorch module's usage.
    x = jax.random.normal(k1, (2, 4, 16, 16), dtype=jnp.float32) * 4.0
    y = jax.block_until_ready(hard_sigmoid(x))
    assert y.shape == x.shape
    assert jnp.allclose(y, _ref_hardsigmoid(x), atol=1e-6), "mismatch (f32 NCHW)"

    # 2) Multi-block grid with a partial (masked) last block.
    x_big = jax.random.normal(k2, (4, 25, 32, 32), dtype=jnp.float32) * 4.0
    y_big = jax.block_until_ready(hard_sigmoid(x_big))
    assert y_big.shape == x_big.shape
    assert jnp.allclose(y_big, _ref_hardsigmoid(x_big), atol=1e-6), "mismatch (multi-block)"

    # 3) Ragged size (not a multiple of 128): kernel bulk + jnp tail path.
    x_rag = jax.random.normal(k3, (3, 5, 7, 11), dtype=jnp.float32) * 4.0
    y_rag = jax.block_until_ready(hard_sigmoid(x_rag))
    assert y_rag.shape == x_rag.shape
    assert jnp.allclose(y_rag, _ref_hardsigmoid(x_rag), atol=1e-6), "mismatch (ragged)"

    # 4) bf16 stays bf16 end-to-end (no f32 upcast doubling DMA bytes).
    xb = x.astype(jnp.bfloat16)
    yb = jax.block_until_ready(hard_sigmoid(xb))
    assert yb.dtype == jnp.bfloat16
    assert jnp.allclose(
        yb.astype(jnp.float32), _ref_hardsigmoid(xb).astype(jnp.float32), atol=1e-2
    ), "mismatch (bf16)"

    # 5) Empty tensor guard.
    x_empty = jnp.zeros((0, 4), dtype=jnp.float32)
    y_empty = jax.block_until_ready(hard_sigmoid(x_empty))
    assert y_empty.shape == (0, 4)

    print("KERNEL_OK")
</pallas_src>

<mosaic_0001>
module attributes {stable_mosaic.version = 11 : i64} {
  func.func @_hardsigmoid_kernel(%arg0: i32, %arg1: memref<2x1024xf32, #tpu.memory_space<vmem>>, %arg2: memref<2x1024xf32, #tpu.memory_space<vmem>>) attributes {dimension_semantics = [#tpu.dimension_semantics<parallel>], iteration_bounds = array<i64: 1>, scalar_prefetch = 0 : i64, scratch_operands = 0 : i64, tpu.core_type = #tpu.core_type<tc>, window_params = [{transform_indices = @transform_0, window_bounds = array<i64: 2, 1024>}, {transform_indices = @transform_1, window_bounds = array<i64: 2, 1024>}]} {
    %c0 = arith.constant 0 : index
    %c0_0 = arith.constant 0 : index
    %0 = vector.load %arg1[%c0, %c0_0] : memref<2x1024xf32, #tpu.memory_space<vmem>>, vector<2x1024xf32>
    %cst = arith.constant 3.000000e+00 : f32
    %1 = vector.broadcast %cst : f32 to vector<2x1024xf32>
    %2 = arith.addf %0, %1 : vector<2x1024xf32>
    %cst_1 = arith.constant 0.000000e+00 : f32
    %3 = vector.broadcast %cst_1 : f32 to vector<2x1024xf32>
    %4 = arith.maximumf %2, %3 : vector<2x1024xf32>
    %cst_2 = arith.constant 6.000000e+00 : f32
    %5 = vector.broadcast %cst_2 : f32 to vector<2x1024xf32>
    %6 = arith.minimumf %4, %5 : vector<2x1024xf32>
    %cst_3 = arith.constant 0.166666672 : f32
    %7 = vector.broadcast %cst_3 : f32 to vector<2x1024xf32>
    %8 = arith.mulf %6, %7 : vector<2x1024xf32>
    %c0_4 = arith.constant 0 : index
    %c0_5 = arith.constant 0 : index
    %9 = vector.load %arg2[%c0_4, %c0_5] : memref<2x1024xf32, #tpu.memory_space<vmem>>, vector<2x1024xf32>
    tpu.vector_store %arg2[%c0_4, %c0_5], %8 {strides = array<i32>} : memref<2x1024xf32, #tpu.memory_space<vmem>>, vector<2x1024xf32>,
    return
  }
  func.func @transform_0(%arg0: i32) -> (i32, i32) {
    %c0_i32 = arith.constant 0 : i32
    %c0_i32_0 = arith.constant 0 : i32
    return %arg0, %c0_i32 : i32, i32
  }
  func.func @transform_1(%arg0: i32) -> (i32, i32) {
    %c0_i32 = arith.constant 0 : i32
    %c0_i32_0 = arith.constant 0 : i32
    return %arg0, %c0_i32 : i32, i32
  }
}

</mosaic_0001>

<bundles_post_ra>
// kernel: tpu_custom_call.1
= control target key start
LH: loop header
LB: loop body
LE: loop exit
PB: predicated region body
PF: predicated region fallthrough
CT: control target
= control target key end

     0   :  { %6 = vsyncpa [#allocation3], 0  ;;  %s134_s0 = inlined_call_operand.hbm [shape: f32[2,1024], index: 0, kind: input, shape index: {}]   ;;  %s135_s1 = inlined_call_operand.hbm [shape: f32[2,1024], index: 1, kind: output, shape index: {}]  }
   0x1   :  { %7 = vsyncpa [#allocation4], 0  ;;  %s98_s6 = smov [#allocation2]   ;;  %s50_s10 = scalar_lea.hbm %s134_s0, 256 }
   0x2   :  { %s14_s7 = sshll.u32 %s98_s6, 4  ;;  %p51_p0 = scmp.ne.s32.totalorder %s134_s0, %s50_s10  ;;  %s15_s7 = int_to_ptr.vmem [resolvable:$true] %s14_s7 }
   0x3   :  { %p54_p1 = scmp.lt.u32.totalorder %s50_s10, %s134_s0 }
   0x5   :  { %p56_p2 = pnand %p54_p1, %p51_p0 }
   0x7   :  { %59 = shalt.err (!%p56_p2)
}
   0x8   :  { %s60_s15 = scalar_lea.vmem %s15_s7, 256  ;;  %p65_p4 = scmp.lt.s32.totalorder %s15_s7, %s15_s7 }
   0x9   :  { %p61_p3 = scmp.ne.s32.totalorder %s15_s7, %s60_s15  ;;  %p66_p5 = scmp.lt.s32.totalorder %s60_s15, %s60_s15 }
   0xb   :  { %p67_p6 = por %p66_p5, %p65_p4 }
   0xd   :  { %p68_p7 = pnand %p67_p6, %p61_p3 }
   0xf   :  { %71 = shalt.err (!%p68_p7)
}
  0x10   :  { %17 = dma.hbm_to_vmem [thread:$0]  %s134_s0, 256, %s15_s7, [#allocation3]  }
  0x11   :  { %94 = dma.done.wait [#allocation3], 256  }
  0x12   :  { %95 = vsyncadd [#allocation3], 4294967040  ;;  %v21_v0 = vld [vmem:[#allocation2] sm:$0xff]  ;;  %v22_v1 = vld [vmem:[#allocation2 + $0x8] sm:$0xff]  ;;  %s99_s18 = smov [#allocation5]  }
  0x13   :  { %v23_v2 = vadd.f32 3.0, %v21_v0  ;;  %v24_v3 = vadd.f32 3.0, %v22_v1  ;;  %s39_s19 = sshll.u32 %s99_s18, 4  ;;  %s40_s19 = int_to_ptr.vmem [resolvable:$true] %s39_s19 }
  0x14   :  { %s72_s20 = scalar_lea.vmem %s40_s19, 256  ;;  %p77_p9 = scmp.lt.s32.totalorder %s40_s19, %s40_s19 }
  0x15   :  { %v25_v4 = vmax.f32 %v23_v2, 0.0  ;;  %v26_v5 = vmax.f32 %v24_v3, 0.0  ;;  %p73_p8 = scmp.ne.s32.totalorder %s40_s19, %s72_s20  ;;  %p78_p10 = scmp.lt.s32.totalorder %s72_s20, %s72_s20 }
  0x17   :  { %v27_v6 = vmin.f32 %v25_v4, 6.0  ;;  %v28_v7 = vmin.f32 %v26_v5, 6.0  ;;  %p79_p11 = por %p78_p10, %p77_p9 }
  0x19   :  { %v29_v8 = vmul.f32 0.16666667, %v27_v6  ;;  %v30_v9 = vmul.f32 0.16666667, %v28_v7  ;;  %p80_p12 = pnand %p79_p11, %p73_p8 }
  0x1b   :  { %31 = vst [vmem:[#allocation5] sm:$0xff] %v29_v8  ;;  %32 = vst [vmem:[#allocation5 + $0x8] sm:$0xff] %v30_v9 }
  0x1c   :  { %83 = shalt.err (!%p80_p12)
}
  0x1d   :  { %s84_s22 = scalar_lea.hbm %s135_s1, 256 }
  0x1e   :  { %p85_p13 = scmp.ne.s32.totalorder %s135_s1, %s84_s22  ;;  %p88_p0 = scmp.lt.u32.totalorder %s84_s22, %s135_s1 }
  0x20   :  { %p90_p1 = pnand %p88_p0, %p85_p13 }
  0x22   :  { %93 = shalt.err (!%p90_p1)
}
  0x23   :  { %42 = dma.vmem_to_hbm [thread:$0]  %s40_s19, 256, %s135_s1, [#allocation4]  }
  0x24   :  { %96 = dma.done.wait [#allocation4], 256  }
  0x25   :  { %97 = vsyncadd [#allocation4], 4294967040 }
  0x26   :  { %46 = vsyncpa [#allocation3], 1 }
  0x27   :  { %47 = vsyncpa [#allocation4], 1 }

</bundles_post_ra>
